<compile_context>
chip_gen: v6e
topology: v6e:2x2x1
jax: 0.10.0
libtpu: 0.0.40
codegen_flags: <defaults>
</compile_context>

<pallas_src>
import math

import jax
import jax.numpy as jnp
from jax.experimental import pallas as pl
from jax.experimental.pallas import tpu as pltpu


# ---------------------------------------------------------------------------
# numerics helpers (pure jnp -> shared by the kernels and the JAX reference)
# ---------------------------------------------------------------------------
def _softplus(x):
    # matches torch.nn.functional.softplus (beta=1, threshold=20)
    return jnp.where(x > 20.0, x, jnp.log1p(jnp.exp(jnp.minimum(x, 20.0))))


def _bn_cols(z, eps=1e-5):
    # BatchNorm1d(affine=False), training-mode batch statistics, biased var.
    # One-pass variance E[z^2] - E[z]^2 (clamped at 0) to halve reduction passes.
    mean = jnp.mean(z, axis=0, keepdims=True)
    var = jnp.maximum(jnp.mean(z * z, axis=0, keepdims=True) - mean * mean, 0.0)
    return (z - mean) * jax.lax.rsqrt(var + eps)


def _theta_from_gamma(g):
    # Dirichlet rsample = normalized independent Gamma draws; clamp the sum so
    # rows of all-tiny gamma draws (alpha at the 0.01 floor) don't give inf/NaN.
    s = jnp.maximum(jnp.sum(g, axis=1, keepdims=True), 1e-30)
    return g / s


def _round_up(n, m):
    return ((n + m - 1) // m) * m


def _pick_tile(total, preferred, step):
    # largest multiple of `step` that divides `total` and is <= preferred
    # (assumes total is a multiple of step)
    t = max(step, (min(preferred, total) // step) * step)
    while total % t != 0:
        t -= step
    return t


_VMEM_LIMIT = 32 * 1024 * 1024  # explicit scoped-VMEM budget, safe on v5e/v6e/v7x


# ---------------------------------------------------------------------------
# Kernel 1: encoder MLP (batch-tiled, bf16 resident weights) -> z = (B, Kpad)
# ---------------------------------------------------------------------------
def _encoder_mlp_kernel(x_ref, w1_ref, b1_ref, w2_ref, b2_ref, w3_ref, b3_ref,
                        z_ref):
    x = x_ref[...].astype(jnp.bfloat16)
    h1 = _softplus(jnp.dot(x, w1_ref[...],
                           preferred_element_type=jnp.float32) + b1_ref[...])
    h2 = _softplus(jnp.dot(h1.astype(jnp.bfloat16), w2_ref[...],
                           preferred_element_type=jnp.float32) + b2_ref[...])
    z_ref[...] = jnp.dot(h2.astype(jnp.bfloat16), w3_ref[...],
                         preferred_element_type=jnp.float32) + b3_ref[...]


# ---------------------------------------------------------------------------
# Kernel 2: full-batch BatchNorm + softplus + clamp on z  ->  alpha (B, K)
# (tiny: z is only (B, Kpad); needs the whole batch for the BN statistics)
# ---------------------------------------------------------------------------
def _encoder_bn_kernel(z_ref, alpha_ref):
    zn = _bn_cols(z_ref[...])
    alpha = jnp.maximum(_softplus(zn), 0.01)
    alpha_ref[...] = alpha[:, :alpha_ref.shape[1]]   # drop padded topic columns


# ---------------------------------------------------------------------------
# Kernel 3: decoder stats pass (grid over vocab tiles, "arbitrary")
#           online-softmax running max / running sum-of-exp accumulators
# ---------------------------------------------------------------------------
def _make_dec_stats_kernel(tile_v, v_actual):
    def kernel(g_ref, beta_ref, m_ref, l_ref):
        j = pl.program_id(0)

        @pl.when(j == 0)
        def _init():
            m_ref[...] = jnp.full_like(m_ref, -jnp.inf)
            l_ref[...] = jnp.zeros_like(l_ref)

        theta = _theta_from_gamma(g_ref[...])
        logits = jnp.dot(theta.astype(jnp.bfloat16), beta_ref[...],
                         preferred_element_type=jnp.float32)
        ln = _bn_cols(logits)
        # mask padded vocab columns out of the softmax statistics
        col = j * tile_v + jax.lax.broadcasted_iota(jnp.int32, ln.shape, 1)
        ln = jnp.where(col < v_actual, ln, -1e30)

        m_old = m_ref[...]
        m_new = jnp.maximum(m_old, jnp.max(ln, axis=1, keepdims=True))
        l_ref[...] = (l_ref[...] * jnp.exp(m_old - m_new)
                      + jnp.sum(jnp.exp(ln - m_new), axis=1, keepdims=True))
        m_ref[...] = m_new

    return kernel


# ---------------------------------------------------------------------------
# Kernel 4: decoder normalize pass (grid over vocab tiles, "parallel")
# ---------------------------------------------------------------------------
def _dec_softmax_kernel(g_ref, beta_ref, m_ref, l_ref, out_ref):
    theta = _theta_from_gamma(g_ref[...])
    logits = jnp.dot(theta.astype(jnp.bfloat16), beta_ref[...],
                     preferred_element_type=jnp.float32)
    ln = _bn_cols(logits)
    e = jnp.exp(ln - m_ref[...])
    out_ref[...] = e * pl.reciprocal(l_ref[...], approx=False)


# ---------------------------------------------------------------------------
# Wrappers
# ---------------------------------------------------------------------------
def encoder_forward(params, x, *, batch_tile=256):
    dims = params["dims"]
    B, E = x.shape
    Hp, Kp, K = dims["h_pad"], dims["k_pad"], dims["topic_size"]

    Bp = _round_up(B, 8)
    if Bp != B:
        x = jnp.pad(x, ((0, Bp - B), (0, 0)))
    tb = _pick_tile(Bp, batch_tile, 8)
    grid = (Bp // tb,)

    flops = int(2 * Bp * (E * Hp + Hp * Hp + Hp * Kp))
    trans = int(2 * Bp * Hp)
    bytes_accessed = int(4 * Bp * E + 2 * (E * Hp + Hp * Hp + Hp * Kp)
                         + 4 * (2 * Hp + Kp) + 4 * Bp * Kp)

    z = pl.pallas_call(
        _encoder_mlp_kernel,
        out_shape=jax.ShapeDtypeStruct((Bp, Kp), jnp.float32),
        grid=grid,
        in_specs=[
            pl.BlockSpec((tb, E), lambda i: (i, 0)),       # x (batch-tiled)
            pl.BlockSpec((E, Hp), lambda i: (0, 0)),       # w1 (resident)
            pl.BlockSpec((1, Hp), lambda i: (0, 0)),       # b1
            pl.BlockSpec((Hp, Hp), lambda i: (0, 0)),      # w2
            pl.BlockSpec((1, Hp), lambda i: (0, 0)),       # b2
            pl.BlockSpec((Hp, Kp), lambda i: (0, 0)),      # w3
            pl.BlockSpec((1, Kp), lambda i: (0, 0)),       # b3
        ],
        out_specs=pl.BlockSpec((tb, Kp), lambda i: (i, 0)),
        compiler_params=pltpu.CompilerParams(
            dimension_semantics=("parallel",),
            vmem_limit_bytes=_VMEM_LIMIT),
        cost_estimate=pl.CostEstimate(flops=flops, transcendentals=trans,
                                      bytes_accessed=bytes_accessed),
    )(x, params["w1"], params["b1"], params["w2"], params["b2"],
      params["w3"], params["b3"])

    if Bp != B:
        z = z[:B]   # drop padded batch rows so BN statistics use the real batch

    alpha = pl.pallas_call(
        _encoder_bn_kernel,
        out_shape=jax.ShapeDtypeStruct((B, K), jnp.float32),
        in_specs=[pl.BlockSpec(memory_space=pltpu.MemorySpace.VMEM)],
        out_specs=pl.BlockSpec(memory_space=pltpu.MemorySpace.VMEM),
    )(z)
    return alpha


def decoder_forward(params, gamma, *, vocab_tile=512):
    dims = params["dims"]
    B, K = gamma.shape
    beta = params["beta"]               # (Kp, Vp) bf16, zero-padded
    Kp, Vp = beta.shape
    V = dims["input_size"]

    g = jnp.pad(gamma, ((0, 0), (0, Kp - K)))     # padded topics contribute 0
    tv = _pick_tile(Vp, vocab_tile, 128)
    grid = (Vp // tv,)

    gamma_spec = pl.BlockSpec((B, Kp), lambda j: (0, 0))   # resident
    beta_spec = pl.BlockSpec((Kp, tv), lambda j: (0, j))   # streamed over vocab
    stat_spec = pl.BlockSpec((B, 1), lambda j: (0, 0))     # (B,1) accumulators

    flops = int(2 * B * Kp * Vp)
    trans = int(B * Vp)
    base_bytes = int(2 * Kp * Vp + 4 * B * Kp + 8 * B)

    m, l = pl.pallas_call(
        _make_dec_stats_kernel(tv, V),
        out_shape=(jax.ShapeDtypeStruct((B, 1), jnp.float32),
                   jax.ShapeDtypeStruct((B, 1), jnp.float32)),
        grid=grid,
        in_specs=[gamma_spec, beta_spec],
        out_specs=(stat_spec, stat_spec),
        compiler_params=pltpu.CompilerParams(
            dimension_semantics=("arbitrary",),
            vmem_limit_bytes=_VMEM_LIMIT),
        cost_estimate=pl.CostEstimate(flops=flops, transcendentals=trans,
                                      bytes_accessed=base_bytes),
    )(g, beta)

    wd = pl.pallas_call(
        _dec_softmax_kernel,
        out_shape=jax.ShapeDtypeStruct((B, Vp), jnp.float32),
        grid=grid,
        in_specs=[gamma_spec, beta_spec, stat_spec, stat_spec],
        out_specs=pl.BlockSpec((B, tv), lambda j: (0, j)),
        compiler_params=pltpu.CompilerParams(
            dimension_semantics=("parallel",),
            vmem_limit_bytes=_VMEM_LIMIT),
        cost_estimate=pl.CostEstimate(flops=flops, transcendentals=trans,
                                      bytes_accessed=base_bytes + 4 * B * Vp),
    )(g, beta, m, l)

    return wd[:, :V] if Vp != V else wd


def dirichlet_vae_forward(params, x, sample_key, *, batch_tile=256,
                          vocab_tile=512):
    alpha = encoder_forward(params, x, batch_tile=batch_tile)
    # TODO(synk): Gamma rejection sampling (Dirichlet.rsample) stays in JAX glue.
    gamma = jax.random.gamma(sample_key, alpha)
    word_dist = decoder_forward(params, gamma, vocab_tile=vocab_tile)
    return params["alpha_prior"], alpha, word_dist


# ---------------------------------------------------------------------------
# Parameter construction (mirrors the PyTorch __init__, then pads + casts to
# the kernel-ready bf16 layouts; padded rows/columns are exactly zero)
# ---------------------------------------------------------------------------
def init_params(key, input_size, embedding_size, topic_size, hidden=100):
    h_pad = _round_up(hidden, 128)
    k_pad = _round_up(topic_size, 128)
    v_pad = _round_up(input_size, 128)
    ks = jax.random.split(key, 7)

    def linear(kw, kb, fan_in, fan_out, rows_pad, cols_pad):
        bound = 1.0 / math.sqrt(fan_in)   # PyTorch default Linear init range
        w = jax.random.uniform(kw, (fan_in, fan_out), jnp.float32,
                               minval=-bound, maxval=bound)
        b = jax.random.uniform(kb, (fan_out,), jnp.float32,
                               minval=-bound, maxval=bound)
        w_p = jnp.zeros((rows_pad, cols_pad), jnp.float32)
        w_p = w_p.at[:fan_in, :fan_out].set(w).astype(jnp.bfloat16)
        b_p = jnp.zeros((1, cols_pad), jnp.float32).at[0, :fan_out].set(b)
        return w_p, b_p

    w1, b1 = linear(ks[0], ks[1], embedding_size, hidden, embedding_size, h_pad)
    w2, b2 = linear(ks[2], ks[3], hidden, hidden, h_pad, h_pad)
    w3, b3 = linear(ks[4], ks[5], hidden, topic_size, h_pad, k_pad)

    # beta: xavier_uniform_ over (topic_size, input_size), then zero-pad + bf16
    xb = math.sqrt(6.0 / (topic_size + input_size))
    beta = jax.random.uniform(ks[6], (topic_size, input_size), jnp.float32,
                              minval=-xb, maxval=xb)
    beta_pad = jnp.zeros((k_pad, v_pad), jnp.float32)
    beta_pad = beta_pad.at[:topic_size, :input_size].set(beta).astype(jnp.bfloat16)

    alpha_prior = jnp.full((1, topic_size), 0.002, dtype=jnp.float32)

    return dict(
        w1=w1, b1=b1, w2=w2, b2=b2, w3=w3, b3=b3,
        beta=beta_pad, alpha_prior=alpha_prior,
        dims=dict(input_size=input_size, embedding_size=embedding_size,
                  topic_size=topic_size, hidden=hidden,
                  h_pad=h_pad, k_pad=k_pad, v_pad=v_pad))


# ---------------------------------------------------------------------------
# Pure-JAX reference (same padded bf16 params / same gamma draws)
# ---------------------------------------------------------------------------
def _reference_forward(params, x, gamma):
    dims = params["dims"]
    K, V = dims["topic_size"], dims["input_size"]
    h1 = _softplus(jnp.dot(x.astype(jnp.bfloat16), params["w1"],
                           preferred_element_type=jnp.float32) + params["b1"])
    h2 = _softplus(jnp.dot(h1.astype(jnp.bfloat16), params["w2"],
                           preferred_element_type=jnp.float32) + params["b2"])
    z = jnp.dot(h2.astype(jnp.bfloat16), params["w3"],
                preferred_element_type=jnp.float32) + params["b3"]
    alpha = jnp.maximum(_softplus(_bn_cols(z)), 0.01)[:, :K]

    g = jnp.pad(gamma, ((0, 0), (0, params["beta"].shape[0] - K)))
    theta = _theta_from_gamma(g)
    ln = _bn_cols(jnp.dot(theta.astype(jnp.bfloat16), params["beta"],
                          preferred_element_type=jnp.float32))[:, :V]
    m = jnp.max(ln, axis=1, keepdims=True)
    e = jnp.exp(ln - m)
    return alpha, e / jnp.sum(e, axis=1, keepdims=True)


if __name__ == "__main__":
    # Small, forward-consistent shapes:
    #   x: (batch, embedding_size) = (16, 32); K = 16 topics; vocab V = 1000
    #   (V is intentionally not a multiple of 128 to exercise vocab padding +
    #    masking; batch_tile=8 / vocab_tile=512 exercise both grids.)
    B, E, K, V = 16, 32, 16, 1000

    root = jax.random.PRNGKey(0)
    k_param, k_x, k_sample = jax.random.split(root, 3)

    params = init_params(k_param, input_size=V, embedding_size=E, topic_size=K)
    x = jax.random.normal(k_x, (B, E), dtype=jnp.float32)

    alpha_prior, alpha, word_dist = dirichlet_vae_forward(
        params, x, k_sample, batch_tile=8, vocab_tile=512)
    jax.block_until_ready((alpha_prior, alpha, word_dist))

    # structural / invariant checks
    assert alpha_prior.shape == (1, K)
    assert alpha.shape == (B, K)
    assert word_dist.shape == (B, V)
    assert bool(jnp.all(jnp.isfinite(alpha)))
    assert bool(jnp.all(alpha >= 0.01))
    assert bool(jnp.allclose(jnp.sum(word_dist, axis=1), 1.0, atol=1e-4))

    # consistency against a pure-JAX reference using the same gamma draws
    gamma = jax.random.gamma(k_sample, alpha)
    alpha_ref, wd_ref = _reference_forward(params, x, gamma)
    assert bool(jnp.allclose(alpha, alpha_ref, atol=5e-3))
    assert bool(jnp.allclose(word_dist, wd_ref, atol=5e-3))

    print("KERNEL_OK")
</pallas_src>

<mosaic_0001>
module attributes {stable_mosaic.version = 11 : i64} {
  func.func @_encoder_mlp_kernel(%arg0: i32, %arg1: memref<8x32xf32, #tpu.memory_space<vmem>>, %arg2: memref<32x128xbf16, #tpu.memory_space<vmem>>, %arg3: memref<1x128xf32, #tpu.memory_space<vmem>>, %arg4: memref<128x128xbf16, #tpu.memory_space<vmem>>, %arg5: memref<1x128xf32, #tpu.memory_space<vmem>>, %arg6: memref<128x128xbf16, #tpu.memory_space<vmem>>, %arg7: memref<1x128xf32, #tpu.memory_space<vmem>>, %arg8: memref<8x128xf32, #tpu.memory_space<vmem>>) attributes {dimension_semantics = [#tpu.dimension_semantics<parallel>], iteration_bounds = array<i64: 2>, scalar_prefetch = 0 : i64, scratch_operands = 0 : i64, tpu.core_type = #tpu.core_type<tc>, window_params = [{transform_indices = @transform_0, window_bounds = array<i64: 8, 32>}, {pipeline_mode = #tpu.pipeline_mode<synchronous>, transform_indices = @transform_1, window_bounds = array<i64: 32, 128>}, {pipeline_mode = #tpu.pipeline_mode<synchronous>, transform_indices = @transform_2, window_bounds = array<i64: 1, 128>}, {pipeline_mode = #tpu.pipeline_mode<synchronous>, transform_indices = @transform_3, window_bounds = array<i64: 128, 128>}, {pipeline_mode = #tpu.pipeline_mode<synchronous>, transform_indices = @transform_4, window_bounds = array<i64: 1, 128>}, {pipeline_mode = #tpu.pipeline_mode<synchronous>, transform_indices = @transform_5, window_bounds = array<i64: 128, 128>}, {pipeline_mode = #tpu.pipeline_mode<synchronous>, transform_indices = @transform_6, window_bounds = array<i64: 1, 128>}, {transform_indices = @transform_7, window_bounds = array<i64: 8, 128>}]} {
    %c0 = arith.constant 0 : index
    %c0_0 = arith.constant 0 : index
    %0 = vector.load %arg1[%c0, %c0_0] : memref<8x32xf32, #tpu.memory_space<vmem>>, vector<8x32xf32>
    %1 = arith.truncf %0 : vector<8x32xf32> to vector<8x32xbf16>
    %c0_1 = arith.constant 0 : index
    %c0_2 = arith.constant 0 : index
    %2 = vector.load %arg2[%c0_1, %c0_2] : memref<32x128xbf16, #tpu.memory_space<vmem>>, vector<32x128xbf16>
    %cst = arith.constant dense<0.000000e+00> : vector<8x128xf32>
    %3 = tpu.matmul %1, %2, %cst {dimension_numbers = #tpu.dot_dimension_numbers<[1], [0], [0], [1], [0, 0, 1, 1], [], []>} : vector<8x32xbf16>, vector<32x128xbf16>, vector<8x128xf32> -> vector<8x128xf32>
    %c0_3 = arith.constant 0 : index
    %c0_4 = arith.constant 0 : index
    %4 = vector.load %arg3[%c0_3, %c0_4] : memref<1x128xf32, #tpu.memory_space<vmem>>, vector<1x128xf32>
    %5 = vector.broadcast %4 : vector<1x128xf32> to vector<8x128xf32>
    %6 = arith.addf %3, %5 : vector<8x128xf32>
    %cst_5 = arith.constant 2.000000e+01 : f32
    %7 = vector.broadcast %cst_5 : f32 to vector<8x128xf32>
    %8 = arith.cmpf ogt, %6, %7 : vector<8x128xf32>
    %cst_6 = arith.constant 2.000000e+01 : f32
    %9 = vector.broadcast %cst_6 : f32 to vector<8x128xf32>
    %10 = arith.minimumf %6, %9 : vector<8x128xf32>
    %11 = math.exp %10 : vector<8x128xf32>
    %12 = math.log1p %11 : vector<8x128xf32>
    %13 = arith.select %8, %6, %12 : vector<8x128xi1>, vector<8x128xf32>
    %14 = arith.truncf %13 : vector<8x128xf32> to vector<8x128xbf16>
    %c0_7 = arith.constant 0 : index
    %c0_8 = arith.constant 0 : index
    %15 = vector.load %arg4[%c0_7, %c0_8] : memref<128x128xbf16, #tpu.memory_space<vmem>>, vector<128x128xbf16>
    %cst_9 = arith.constant dense<0.000000e+00> : vector<8x128xf32>
    %16 = tpu.matmul %14, %15, %cst_9 {dimension_numbers = #tpu.dot_dimension_numbers<[1], [0], [0], [1], [0, 0, 1, 1], [], []>} : vector<8x128xbf16>, vector<128x128xbf16>, vector<8x128xf32> -> vector<8x128xf32>
    %c0_10 = arith.constant 0 : index
    %c0_11 = arith.constant 0 : index
    %17 = vector.load %arg5[%c0_10, %c0_11] : memref<1x128xf32, #tpu.memory_space<vmem>>, vector<1x128xf32>
    %18 = vector.broadcast %17 : vector<1x128xf32> to vector<8x128xf32>
    %19 = arith.addf %16, %18 : vector<8x128xf32>
    %cst_12 = arith.constant 2.000000e+01 : f32
    %20 = vector.broadcast %cst_12 : f32 to vector<8x128xf32>
    %21 = arith.cmpf ogt, %19, %20 : vector<8x128xf32>
    %cst_13 = arith.constant 2.000000e+01 : f32
    %22 = vector.broadcast %cst_13 : f32 to vector<8x128xf32>
    %23 = arith.minimumf %19, %22 : vector<8x128xf32>
    %24 = math.exp %23 : vector<8x128xf32>
    %25 = math.log1p %24 : vector<8x128xf32>
    %26 = arith.select %21, %19, %25 : vector<8x128xi1>, vector<8x128xf32>
    %27 = arith.truncf %26 : vector<8x128xf32> to vector<8x128xbf16>
    %c0_14 = arith.constant 0 : index
    %c0_15 = arith.constant 0 : index
    %28 = vector.load %arg6[%c0_14, %c0_15] : memref<128x128xbf16, #tpu.memory_space<vmem>>, vector<128x128xbf16>
    %cst_16 = arith.constant dense<0.000000e+00> : vector<8x128xf32>
    %29 = tpu.matmul %27, %28, %cst_16 {dimension_numbers = #tpu.dot_dimension_numbers<[1], [0], [0], [1], [0, 0, 1, 1], [], []>} : vector<8x128xbf16>, vector<128x128xbf16>, vector<8x128xf32> -> vector<8x128xf32>
    %c0_17 = arith.constant 0 : index
    %c0_18 = arith.constant 0 : index
    %30 = vector.load %arg7[%c0_17, %c0_18] : memref<1x128xf32, #tpu.memory_space<vmem>>, vector<1x128xf32>
    %31 = vector.broadcast %30 : vector<1x128xf32> to vector<8x128xf32>
    %32 = arith.addf %29, %31 : vector<8x128xf32>
    %c0_19 = arith.constant 0 : index
    %c0_20 = arith.constant 0 : index
    %33 = vector.load %arg8[%c0_19, %c0_20] : memref<8x128xf32, #tpu.memory_space<vmem>>, vector<8x128xf32>
    tpu.vector_store %arg8[%c0_19, %c0_20], %32 {strides = array<i32>} : memref<8x128xf32, #tpu.memory_space<vmem>>, vector<8x128xf32>,
    return
  }
  func.func @transform_0(%arg0: i32) -> (i32, i32) {
    %c0_i32 = arith.constant 0 : i32
    %c0_i32_0 = arith.constant 0 : i32
    return %arg0, %c0_i32 : i32, i32
  }
  func.func @transform_1(%arg0: i32) -> (i32, i32) {
    %c0_i32 = arith.constant 0 : i32
    %c0_i32_0 = arith.constant 0 : i32
    %c0_i32_1 = arith.constant 0 : i32
    return %c0_i32, %c0_i32_0 : i32, i32
  }
  func.func @transform_2(%arg0: i32) -> (i32, i32) {
    %c0_i32 = arith.constant 0 : i32
    %c0_i32_0 = arith.constant 0 : i32
    %c0_i32_1 = arith.constant 0 : i32
    return %c0_i32, %c0_i32_0 : i32, i32
  }
  func.func @transform_3(%arg0: i32) -> (i32, i32) {
    %c0_i32 = arith.constant 0 : i32
    %c0_i32_0 = arith.constant 0 : i32
    %c0_i32_1 = arith.constant 0 : i32
    return %c0_i32, %c0_i32_0 : i32, i32
  }
  func.func @transform_4(%arg0: i32) -> (i32, i32) {
    %c0_i32 = arith.constant 0 : i32
    %c0_i32_0 = arith.constant 0 : i32
    %c0_i32_1 = arith.constant 0 : i32
    return %c0_i32, %c0_i32_0 : i32, i32
  }
  func.func @transform_5(%arg0: i32) -> (i32, i32) {
    %c0_i32 = arith.constant 0 : i32
    %c0_i32_0 = arith.constant 0 : i32
    %c0_i32_1 = arith.constant 0 : i32
    return %c0_i32, %c0_i32_0 : i32, i32
  }
  func.func @transform_6(%arg0: i32) -> (i32, i32) {
    %c0_i32 = arith.constant 0 : i32
    %c0_i32_0 = arith.constant 0 : i32
    %c0_i32_1 = arith.constant 0 : i32
    return %c0_i32, %c0_i32_0 : i32, i32
  }
  func.func @transform_7(%arg0: i32) -> (i32, i32) {
    %c0_i32 = arith.constant 0 : i32
    %c0_i32_0 = arith.constant 0 : i32
    return %arg0, %c0_i32 : i32, i32
  }
}

</mosaic_0001>

<bundles_post_ra>
// kernel: tpu_custom_call.1
= control target key start
LH: loop header
LB: loop body
LE: loop exit
PB: predicated region body
PF: predicated region fallthrough
CT: control target
= control target key end

     0   :  { %s1442_s0 = inlined_call_operand.hbm [shape: f32[16,32], index: 0, kind: input, shape index: {}]   ;;  %s1443_s1 = inlined_call_operand.hbm [shape: bf16[32,128], index: 1, kind: input, shape index: {}]   ;;  %s1444_s2 = inlined_call_operand.vmem [shape: f32[1,128], index: 2, kind: input, shape index: {}]   ;;  %s1445_s3 = inlined_call_operand.hbm [shape: bf16[128,128], index: 3, kind: input, shape index: {}]   ;;  %s1446_s4 = inlined_call_operand.vmem [shape: f32[1,128], index: 4, kind: input, shape index: {}]   ;;  %s1447_s5 = inlined_call_operand.hbm [shape: bf16[128,128], index: 5, kind: input, shape index: {}]   ;;  %s1448_s6 = inlined_call_operand.vmem [shape: f32[1,128], index: 6, kind: input, shape index: {}]   ;;  %s1449_s7 = inlined_call_operand.hbm [shape: f32[16,128], index: 7, kind: output, shape index: {}]  }
   0x1   :  { %1454 = sst [smem:[#allocation15_spill]] %s1443_s1 }
   0x2   :  { %1455 = sst [smem:[#allocation16_spill]] %s1445_s3 }
   0x3   :  { %12 = vsyncpa [#allocation3], 0 }
   0x4   :  { %14 = vsyncpa [#allocation3 + $0x1], 0 }
   0x5   :  { %15 = vsyncpa [#allocation6], 0 }
   0x6   :  { %16 = vsyncpa [#allocation9], 0 }
   0x7   :  { %17 = vsyncpa [#allocation4], 0 }
   0x8   :  { %19 = vsyncpa [#allocation4 + $0x1], 0  ;;  %s1219_s24 = smov 0   ;;  %s1221_s25 = smov 0  }
   0x9   :  { %s1223_s26 = smov 0   ;;  %s1225_s27 = smov 0  }
   0xa LB: > { %s1240_s28 = sadd.s32 4294967295, %s1168_s27   ;;  %s774_s29 = sadd.s32 4294967294, %s1168_s27   ;;  %s1168_s27 = sphi %s1225_s27, %s1477_s27   ;;  %s1164_s26 = sphi %s1223_s26, %s1476_s26   ;;  %s1160_s25 = sphi %s1221_s25, %s1475_s25   ;;  %s1156_s24 = sphi %s1219_s24, %s1474_s24  }
   0xb   : > { %p45_p0 = scmp.ne.s32.totalorder %s1160_s25, %s1156_s24  ;;  %p1450_p1 = scmp.eq.s32.totalorder %s1240_s28, 0 }
   0xc   : > { %p201_p3 = scmp.eq.s32.totalorder %s774_s29, 1  ;;  %p775_p5 = scmp.ge.s32.totalorder %s1168_s27, 1 }
   0xd   : > { %p1249_p4 = por %p1450_p1, %p45_p0  ;;  %p208_p7 = scmp.lt.s32.totalorder %s1168_s27, 3 }
   0xe   : > { %p1254_p6 = por %p201_p3, %p45_p0  ;;  %s1170_s10 = smov [#allocation5]  }
   0xf   : > { %s1456_s30 = scalar_select %p1249_p4, 1, 0 }
  0x10   : > { %s1457_s8 = scalar_select %p1254_p6, 1, 0 }
  0x11   : > { %p1259_p8 = pnand %p775_p5, %p208_p7  ;;  %s220_s11 = sshll.u32 %s1170_s10, 4  ;;  %s221_s11 = int_to_ptr.vmem [resolvable:$true] %s220_s11 }
  0x12   : > { %s1171_s13 = smov [#allocation7]   ;;  %s1172_s15 = smov [#allocation8]  }
  0x13   : > { %s1458_s9 = scalar_select %p1259_p8, 1, 0 }
  0x14   : > { %p899_p9 = pneg %p1259_p8  ;;  %s236_s14 = sshll.u32 %s1171_s13, 4  ;;  %s237_s14 = int_to_ptr.vmem [resolvable:$true] %s236_s14 }
  0x15   : > { %s252_s16 = sshll.u32 %s1172_s15, 4  ;;  %s1001_s17 = scalar_lea.vmem %s221_s11, 256  ;;  %s253_s16 = int_to_ptr.vmem [resolvable:$true] %s252_s16 }
  0x16   : > { %p1268_p11 = pnand %p899_p9, %p1450_p1  ;;  %p1002_p13 = scmp.ne.s32.totalorder %s221_s11, %s1001_s17 }
  0x17   : > { %p1009_p5 = scmp.lt.s32.totalorder %s221_s11, %s221_s11  ;;  %p1010_p7 = scmp.lt.s32.totalorder %s1001_s17, %s1001_s17 }
  0x18   : > { %p992_p12 = pneg %p1268_p11 }
  0x19   : > { %p1011_p9 = por %p1010_p7, %p1009_p5 }
  0x1a   : > { %p1004_p0 = pnand %p1002_p13, %p992_p12 }
  0x1c   : > { %p1005_p3 = pneg %p1004_p0 }
  0x1e   : > { %p1012_p10 = pnand %p1011_p9, %p1005_p3 }
  0x20   : > { %1015 = shalt.err (!%p1012_p10)
}
  0x21   : > { %s1173_s18 = smov 64   ;;  %s1174_s19 = smov 4  }
  0x22   : > { %s1460_s1 = sld [smem:[#allocation15_spill]]  ;;  %s1027_s22 = scalar_lea.vmem %s237_s14, 1024 }
  0x23   : > { %p1028_p1 = scmp.ne.s32.totalorder %s237_s14, %s1027_s22  ;;  %p1035_p2 = scmp.lt.s32.totalorder %s237_s14, %s237_s14 }
  0x24   : > { %p1036_p6 = scmp.lt.s32.totalorder %s1027_s22, %s1027_s22 }
  0x25   : > { %p1030_p13 = pnand %p1028_p1, %p992_p12 }
  0x26   : > { %p1037_p5 = por %p1036_p6, %p1035_p2 }
  0x27   : > { %p1031_p0 = pneg %p1030_p13 }
  0x28   : > { %902 = dma.hbm_to_vmem [thread:$0]  (!%p1268_p11), %s1460_s1, 256, %s221_s11, [#allocation6], %s1173_s18, %s1173_s18, %s1174_s19  }
  0x29   : > { %p1038_p3 = pnand %p1037_p5, %p1031_p0 }
  0x2b   : > { %1041 = shalt.err (!%p1038_p3)
}
  0x2c   : > { %s1461_s3 = sld [smem:[#allocation16_spill]]  ;;  %s1053_s10 = scalar_lea.vmem %s253_s16, 1024 }
  0x2d   : > { %p1054_p10 = scmp.ne.s32.totalorder %s253_s16, %s1053_s10  ;;  %p1061_p9 = scmp.lt.s32.totalorder %s253_s16, %s253_s16 }
  0x2e   : > { %p1062_p13 = scmp.lt.s32.totalorder %s1053_s10, %s1053_s10 }
  0x2f   : > { %p1056_p7 = pnand %p1054_p10, %p992_p12 }
  0x30   : > { %p1063_p4 = por %p1062_p13, %p1061_p9 }
  0x31   : > { %p1057_p1 = pneg %p1056_p7 }
  0x32   : > { %905 = dma.hbm_to_vmem [thread:$0]  (!%p1268_p11), %s1461_s3, 1024, %s237_s14, [#allocation6], %s1173_s18, %s1173_s18, %s1174_s19  }
  0x33   : > { %p1064_p2 = pnand %p1063_p4, %p1057_p1 }
  0x35   : > { %1067 = shalt.err (!%p1064_p2)
}
  0x36   : > { %908 = dma.hbm_to_vmem [thread:$0]  (!%p1268_p11), %s1447_s5, 1024, %s253_s16, [#allocation9], %s1173_s18, %s1173_s18, %s1174_s19  }
  0x37   : > { %s1299_s14 = sadd.s32 1, %s1168_s27   ;;  %s32_s12 = sadd.s32 1, %s1164_s26 }
  0x38   : > { %s29_s15 = ssub.s32 %s1168_s27, %s1299_s14  ;;  %p39_p6 = scmp.ne.s32.totalorder %s1164_s26, %s1160_s25 }
  0x39   : > { %p30_p4 = scmp.eq.s32.totalorder %s29_s15, 0  ;;  %p40_p12 = scmp.eq.s32.totalorder %s1168_s27, 0 }
  0x3a   : > { %p920_p0 = scmp.lt.s32.totalorder %s1168_s27, 2  ;;  %p1462_p3 = scmp.eq.s32.totalorder %s1240_s28, 1 }
  0x3b   : > { %s1309_s17 = scalar_select %p30_p4, %s1164_s26, %s32_s12  }
  0x3c   : > { %p41_p5 = por %p40_p12, %p39_p6  ;;  %p1313_p10 = por %p1462_p3, %p39_p6 }
  0x3d   : > { %s269_s21 = sand.u32 1, %s1164_s26   ;;  %s781_s22 = sshll.u32 %s1168_s27, 7 }
  0x3e   : > { %s1463_s20 = scalar_select %p1313_p10, 1, 0 }
  0x3f   : > { %s780_s16 = sshll.u32 %s269_s21, 3  ;;  %s1322_s23 = scalar_lea.hbm %s1442_s0, %s781_s22 }
  0x40   : > { %s273_s29 = scalar_lea.vmem [#allocation2], %s780_s16  ;;  %p1324_p11 = pnand %p920_p0, %p41_p5 }
  0x41   : > { %s280_s10 = sshll.u32 %s273_s29, 4  ;;  %s270_s13 = scalar_lea.sflag [#allocation3], %s269_s21  ;;  %s281_s10 = int_to_ptr.vmem [resolvable:$true] %s280_s10 }
  0x42   : > { %s1068_s15 = scalar_lea.hbm %s1322_s23, 128  ;;  %p1070_p1 = pneg %p1324_p11 }
  0x43   : > { %p1069_p7 = scmp.ne.s32.totalorder %s1322_s23, %s1068_s15  ;;  %s1073_s18 = scalar_lea.hbm %s1442_s0, 256 }
  0x44   : > { %p1074_p2 = scmp.lt.s32.totalorder %s1322_s23, %s1442_s0  ;;  %p1075_p4 = scmp.lt.s32.totalorder %s1073_s18, %s1068_s15 }
  0x45   : > { %p1071_p9 = pnand %p1070_p1, %p1069_p7 }
  0x46   : > { %p1076_p6 = por %p1075_p4, %p1074_p2 }
  0x47   : > { %p1072_p13 = pneg %p1071_p9 }
  0x49   : > { %p1077_p12 = pnand %p1076_p6, %p1072_p13 }
  0x4b   : > { %1080 = shalt.err (!%p1077_p12)
}
  0x4c   : > { %s1081_s29 = scalar_lea.vmem %s281_s10, 128  ;;  %s1175_s21 = smov [#allocation2]  }
  0x4d   : > { %p1082_p0 = scmp.ne.s32.totalorder %s281_s10, %s1081_s29  ;;  %s1086_s1 = sshll.u32 %s1175_s21, 4  ;;  %s1087_s1 = int_to_ptr.vmem [resolvable:$false] %s1086_s1 }
  0x4e   : > { %s1088_s3 = scalar_lea.vmem %s1087_s1, 256  ;;  %p1089_p7 = scmp.lt.s32.totalorder %s281_s10, %s1087_s1 }
  0x4f   : > { %p1084_p5 = pnand %p1082_p0, %p1070_p1  ;;  %p1090_p9 = scmp.lt.s32.totalorder %s1088_s3, %s1081_s29 }
  0x51   : > { %p1085_p3 = pneg %p1084_p5  ;;  %p1091_p10 = por %p1090_p9, %p1089_p7 }
  0x53   : > { %p1092_p8 = pnand %p1091_p10, %p1085_p3 }
  0x55   : > { %1095 = shalt.err (!%p1092_p8)
}
  0x56   : > { %912 = dma.hbm_to_vmem [thread:$0]  (!%p1324_p11), %s1322_s23, 128, %s281_s10, %s270_s13  }
  0x57   : > { %p1465_p13 = scmp.ne.s32.totalorder %s1458_s9, 0 }
  0x58   : > { %s1345_s15 = sand.u32 (!%p1465_p13), 1, %s1160_s25   ;;  %p1466_p10 = scmp.ne.s32.totalorder (!%p1465_p13), %s1456_s30, 0 }
  0x59   : > { %289 = sbr.rel (%p1465_p13) target bundleno = 790 (0x316), region = 48  ;;  %s783_s12 = sshll.u32 (!%p1465_p13), %s1345_s15, 3 }
  0x5a   : > { %s292_s1 = scalar_lea.sflag (!%p1465_p13), [#allocation3], %s1345_s15  ;;  %s295_s3 = scalar_lea.vmem (!%p1465_p13), [#allocation2], %s783_s12 }
  0x5e   : > { %1139 = dma.done.wait (%p1466_p10), %s292_s1, 128  }
  0x5f   : > { %1141 = vsyncadd (%p1466_p10), %s292_s1, 4294967168  ;;  %p1467_p8 = scmp.eq.s32.totalorder %s1240_s28, 0 }
  0x61   : > { %1143 = dma.done.wait (%p1467_p8), [#allocation6], 1280   ;;  %p1468_p11 = pmov %p1467_p8 }
  0x62   : > { %p1469_p1 = pmov %p1467_p8 }
  0x63   : > { %1145 = vsyncadd (%p1468_p11), [#allocation6], 4294966016 }
  0x64   : > { %1147 = dma.done.wait (%p1469_p1), [#allocation9], 1024   ;;  %p1470_p2 = pmov %p1469_p1 }
  0x65   : > { %v1176_v0 = vmov 0.0   ;;  %vm1177_vm0 = vmmov 0   ;;  %v964_v1 = vld [vmem:[#allocation5 + $0x8] sm:$0xff]   ;;  %v965_v2 = vld [vmem:[#allocation5] sm:$0xff]   ;;  %v339_v3 = vld [vmem:[%s295_s3] sm:$0xff]  ;;  %vm364_vm1 = vcmask 261120  }
  0x66   : > { %1149 = vsyncadd (%p1470_p2), [#allocation9], 4294966272  ;;  %835 = vmatprep.subr.bf16.mxu0 %v1176_v0  ;;  %839 = vmatprep.mubr.msk.bf16.mxu0 %vm1177_vm0, %v1176_v0  ;;  %v340_v4 = vpack.c.bf16 %v339_v3, %v339_v3  ;;  %v966_v5 = vld [vmem:[#allocation7 + $0x38] sm:$0xff]   ;;  %v967_v6 = vld [vmem:[#allocation7 + $0x30] sm:$0xff]   ;;  %s811_s22 = sshll.u32 %s1240_s28, 7  ;;  %s337_s18 = scalar_lea.vmem [#allocation10], %s783_s12 }
  0x67   : > { %843 = vmatprep.subr.bf16.mxu1 %v1176_v0  ;;  %859 = vmatprep.mubr.msk.bf16.mxu1 %vm1177_vm0, %v1176_v0  ;;  %v968_v7 = vld [vmem:[#allocation7 + $0x28] sm:$0xff]   ;;  %v969_v8 = vld [vmem:[#allocation7 + $0x20] sm:$0xff]   ;;  %v970_v9 = vld [vmem:[#allocation7 + $0x18] sm:$0xff]   ;;  %s675_s19 = sshll.u32 %s337_s18, 4  ;;  %s1399_s21 = scalar_lea.hbm %s1449_s7, %s811_s22  ;;  %s1401_s19 = int_to_ptr.vmem [resolvable:$true] %s675_s19 }
  0x68   : > { %836 = vmatpush3.bf16.msra.mxu0 %v964_v1  ;;  %844 = vmatpush3.bf16.msra.mxu1 %v966_v5  ;;  %v971_v10 = vld [vmem:[#allocation7 + $0x10] sm:$0xff]   ;;  %v972_v11 = vld [vmem:[#allocation7 + $0x8] sm:$0xff]   ;;  %v973_v12 = vld [vmem:[#allocation7] sm:$0xff]   ;;  %s662_s1 = scalar_lea.sflag [#allocation4], %s1345_s15  ;;  %s1096_s28 = scalar_lea.vmem %s1401_s19, 128 }
  0x69   : > { %837 = vmatprep.subr.bf16.mxu0 %v1176_v0  ;;  %845 = vmatprep.subr.bf16.mxu1 %v1176_v0  ;;  %v788_v13 = vld [vmem:[%s1444_s2] ss:$0 sm:$0xff]  ;;  %v974_v32 = vld [vmem:[#allocation8 + $0x38] sm:$0xff]   ;;  %v975_v33 = vld [vmem:[#allocation8 + $0x30] sm:$0xff]   ;;  %p1097_p4 = scmp.ne.s32.totalorder %s1401_s19, %s1096_s28  ;;  %p1471_p6 = scmp.ne.s32.totalorder %s1463_s20, 0 }
  0x6a   : > { %v976_v34 = vld [vmem:[#allocation8 + $0x28] sm:$0xff]   ;;  %v977_v35 = vld [vmem:[#allocation8 + $0x20] sm:$0xff]   ;;  %v978_v36 = vld [vmem:[#allocation8 + $0x18] sm:$0xff]   ;;  %s1178_s12 = smov [#allocation10]  }
  0x6b   : > { %v979_v37 = vld [vmem:[#allocation8 + $0x10] sm:$0xff]   ;;  %v980_v38 = vld [vmem:[#allocation8 + $0x8] sm:$0xff]   ;;  %v981_v39 = vld [vmem:[#allocation8] sm:$0xff]   ;;  %p1098_p12 = pnand %p1097_p4, %p1471_p6  ;;  %s1100_s3 = sshll.u32 %s1178_s12, 4  ;;  %s1101_s3 = int_to_ptr.vmem [resolvable:$false] %s1100_s3 }
  0x6c   : > { %838 = vmatpush3.bf16.msra.mxu0 %v965_v2  ;;  %846 = vmatpush3.bf16.msra.mxu1 %v967_v6  ;;  %v792_v40 = vld [vmem:[%s1446_s4] ss:$0 sm:$0xff]  ;;  %s1102_s30 = scalar_lea.vmem %s1101_s3, 256  ;;  %p1103_p5 = scmp.lt.s32.totalorder %s1401_s19, %s1101_s3 }
  0x6d   : > { %863 = vmatprep.subr.bf16.mxu0 %v1176_v0  ;;  %847 = vmatprep.subr.bf16.mxu1 %v1176_v0  ;;  %v801_v59 = vld [vmem:[%s1448_s6] ss:$0 sm:$0xff]  ;;  %p1099_p0 = pneg %p1098_p12  ;;  %p1104_p3 = scmp.lt.s32.totalorder %s1102_s30, %s1096_s28 }
  0x6f   : > { %840 = vmatmul.mubr.msk.bf16.vlgmr.msra.gmra.mxu0 %vm364_vm1, %v340_v4  ;;  %p1105_p7 = por %p1104_p3, %p1103_p5 }
  0x70   : > { %879 = vmatprep.mubr.msk.bf16.mxu0 %vm1177_vm0, %v1176_v0  ;;  %848 = vmatpush3.bf16.msra.mxu1 %v968_v7 }
  0x71   : > { %849 = vmatprep.subr.bf16.mxu1 %v1176_v0  ;;  %864 = vmatpush3.bf16.msra.mxu0 %v974_v32  ;;  %p1106_p9 = pnand %p1105_p7, %p1099_p0 }
  0x72   : > { %865 = vmatprep.subr.bf16.mxu0 %v1176_v0 }
  0x74   : > { %850 = vmatpush3.bf16.msra.mxu1 %v969_v8 }
  0x75   : > { %851 = vmatprep.subr.bf16.mxu1 %v1176_v0  ;;  %866 = vmatpush3.bf16.msra.mxu0 %v975_v33 }
  0x76   : > { %867 = vmatprep.subr.bf16.mxu0 %v1176_v0 }
  0x78   : > { %852 = vmatpush3.bf16.msra.mxu1 %v970_v9 }
  0x79   : > { %853 = vmatprep.subr.bf16.mxu1 %v1176_v0  ;;  %868 = vmatpush3.bf16.msra.mxu0 %v976_v34 }
  0x7a   : > { %869 = vmatprep.subr.bf16.mxu0 %v1176_v0 }
  0x7c   : > { %854 = vmatpush3.bf16.msra.mxu1 %v971_v10 }
  0x7d   : > { %855 = vmatprep.subr.bf16.mxu1 %v1176_v0  ;;  %870 = vmatpush3.bf16.msra.mxu0 %v977_v35 }
  0x7e   : > { %871 = vmatprep.subr.bf16.mxu0 %v1176_v0 }
  0x80   : > { %856 = vmatpush3.bf16.msra.mxu1 %v972_v11 }
  0x81   : > { %857 = vmatprep.subr.bf16.mxu1 %v1176_v0  ;;  %872 = vmatpush3.bf16.msra.mxu0 %v978_v36 }
  0x82   : > { %873 = vmatprep.subr.bf16.mxu0 %v1176_v0 }
  0x84   : > { %858 = vmatpush3.bf16.msra.mxu1 %v973_v12 }
  0x85   : > { %874 = vmatpush3.bf16.msra.mxu0 %v979_v37 }
  0x86   : > { %875 = vmatprep.subr.bf16.mxu0 %v1176_v0 }
  0x89   : > { %876 = vmatpush3.bf16.msra.mxu0 %v980_v38 }
  0x8a   : > { %877 = vmatprep.subr.bf16.mxu0 %v1176_v0 }
  0x8d   : > { %878 = vmatpush3.bf16.msra.mxu0 %v981_v39 }
 0x12f   : > { %v402_v14 = vpop.f32.mrf.mxu0 }
 0x130   : > { %v403_v15 = vadd.f32 %v788_v13, %v402_v14 }
 0x131   : > { %v841_v16 = vpop.f32.mrf.mxu0 }
 0x132   : > { %v409_v17 = vmin.f32 %v403_v15, 20.0  ;;  %vm408_vm3 = vcmp.gt.f32.partialorder %v403_v15, 20.0 }
 0x133   : > { %v405_v18 = vpop.f32.mrf.mxu0 }
 0x134   : > { %v410_v19 = vmul.f32 1.442695, %v409_v17 }
 0x135   : > { %v842_v20 = vpop.f32.mrf.mxu0 }
 0x136   : > { %982 = vpow2.f32 %v410_v19 }
 0x143   : > { %v983_v21 = vpop.eup %982 }
 0x144   : > { %v412_v22 = vadd.f32 1.0, %v983_v21  ;;  %v415_v23 = vmul.f32 -0.5, %v983_v21  ;;  %v418_v25 = vand.u32 2147483647, %v983_v21 }
 0x146   : > { %984 = vlog2.f32 %v412_v22  ;;  %v416_v24 = vadd.f32 1.0, %v415_v23  ;;  %vm419_vm2 = vcmp.lt.f32.partialorder %v418_v25, 0.0004427343 }
 0x148   : > { %v417_v28 = vmul.f32 %v983_v21, %v416_v24 }
 0x153   : > { %v985_v26 = vpop.eup %984 }
 0x154   : > { %v414_v27 = vmul.f32 0.6931472, %v985_v26 }
 0x156   : > { %v420_v29 = vsel %vm419_vm2, %v417_v28, %v414_v27 }
 0x157   : > { %v421_v30 = vsel %vm408_vm3, %v403_v15, %v420_v29 }
 0x158   : > { %v422_v31 = vpack.c.bf16 %v421_v30, %v421_v30 }
 0x15a   : > { %860 = vmatmul.mubr.bf16.vlgmr.msra.gmra.mxu1 %v422_v31 }
 0x21a   : > { %v528_v41 = vpop.f32.mrf.mxu1 }
 0x21b   : > { %v529_v42 = vadd.f32 %v792_v40, %v528_v41 }
 0x21c   : > { %v861_v43 = vpop.f32.mrf.mxu1 }
 0x21d   : > { %v535_v44 = vmin.f32 %v529_v42, 20.0  ;;  %vm534_vm5 = vcmp.gt.f32.partialorder %v529_v42, 20.0 }
 0x21e   : > { %v531_v45 = vpop.f32.mrf.mxu1 }
 0x21f   : > { %v536_v46 = vmul.f32 1.442695, %v535_v44 }
 0x220   : > { %v862_v47 = vpop.f32.mrf.mxu1 }
 0x221   : > { %986 = vpow2.f32 %v536_v46 }
 0x22e   : > { %v987_v48 = vpop.eup %986 }
 0x22f   : > { %v538_v49 = vadd.f32 1.0, %v987_v48  ;;  %v541_v50 = vmul.f32 -0.5, %v987_v48  ;;  %v544_v52 = vand.u32 2147483647, %v987_v48 }
 0x231   : > { %988 = vlog2.f32 %v538_v49  ;;  %v542_v51 = vadd.f32 1.0, %v541_v50  ;;  %vm545_vm4 = vcmp.lt.f32.partialorder %v544_v52, 0.0004427343 }
 0x233   : > { %v543_v55 = vmul.f32 %v987_v48, %v542_v51 }
 0x23e   : > { %v989_v53 = vpop.eup %988 }
 0x23f   : > { %v540_v54 = vmul.f32 0.6931472, %v989_v53 }
 0x241   : > { %v546_v56 = vsel %vm545_vm4, %v543_v55, %v540_v54 }
 0x242   : > { %v547_v57 = vsel %vm534_vm5, %v529_v42, %v546_v56 }
 0x243   : > { %v548_v58 = vpack.c.bf16 %v547_v57, %v547_v57 }
 0x245   : > { %880 = vmatmul.mubr.bf16.vlgmr.msra.gmra.mxu0 %v548_v58 }
 0x305   : > { %v654_v60 = vpop.f32.mrf.mxu0 }
 0x306   : > { %v655_v61 = vadd.f32 %v801_v59, %v654_v60 }
 0x307   : > { %v881_v62 = vpop.f32.mrf.mxu0 }
 0x308   : > { %660 = vst [vmem:[%s337_s18] sm:$0xff] %v655_v61 }
 0x309   : > { %v657_v63 = vpop.f32.mrf.mxu0 }
 0x30a   : > { %1109 = shalt.err (!%p1106_p9)
}
 0x30b   : > { %s1110_s9 = scalar_lea.hbm %s1399_s21, 128  ;;  %s1114_s10 = scalar_lea.hbm %s1449_s7, 256 }
 0x30c   : > { %p1111_p13 = scmp.ne.s32.totalorder %s1399_s21, %s1110_s9  ;;  %p1115_p11 = scmp.lt.s32.totalorder %s1399_s21, %s1449_s7 }
 0x30d   : > { %p1116_p1 = scmp.lt.s32.totalorder %s1114_s10, %s1110_s9 }
 0x30e   : > { %p1112_p10 = pnand %p1111_p13, %p1471_p6 }
 0x30f   : > { %p1117_p2 = por %p1116_p1, %p1115_p11 }
 0x310   : > { %p1113_p8 = pneg %p1112_p10 }
 0x312   : > { %p1118_p4 = pnand %p1117_p2, %p1113_p8 }
 0x314   : > { %1121 = shalt.err (!%p1118_p4)
}
 0x315   : > { %897 = dma.vmem_to_hbm [thread:$0]  (%p1471_p6), %s1401_s19, 128, %s1399_s21, %s662_s1   ;;  %v882_v0 = vpop.f32.mrf.mxu0 }
 0x316 PF: > { %s687_s22 = sand.u32 1, %s1156_s24   ;;  %p1472_p12 = scmp.ne.s32.totalorder %s1457_s8, 0 }
 0x317   : > { %p1473_p0 = scmp.ge.s32.totalorder %s1168_s27, 2  ;;  %s688_s18 = scalar_lea.sflag [#allocation4], %s687_s22 }
 0x319   : > { %p914_p5 = pnand %p1473_p0, %p1472_p12 }
 0x31b   : > { %p915_p3 = pneg %p914_p5 }
 0x31d   : > { %1151 = dma.done.wait (%p915_p3), %s688_s18, 128  }
 0x31e   : > { %1153 = vsyncadd (%p915_p3), %s688_s18, 4294967168  ;;  %p22_p7 = scmp.ge.s32.totalorder %s1299_s14, 4   ;;  %s1474_s24 = smov %s1160_s25 }
 0x31f   : > { %s1475_s25 = smov %s1164_s26  ;;  %s1476_s26 = smov %s1309_s17 }
 0x320   : > { %s1477_s27 = smov %s1299_s14  ;;  %24 = sbr.rel (!%p22_p7) target bundleno = 10 (0xa), region = 105 }
 0x325   :  { %693 = vsyncpa [#allocation3], 1 }
 0x326   :  { %695 = vsyncpa [#allocation3 + $0x1], 1 }
 0x327   :  { %696 = vsyncpa [#allocation6], 1 }
 0x328   :  { %697 = vsyncpa [#allocation9], 1 }
 0x329   :  { %698 = vsyncpa [#allocation4], 1 }
 0x32a   :  { %700 = vsyncpa [#allocation4 + $0x1], 1 }

</bundles_post_ra>
